<compile_context>
chip_gen: v7x
topology: tpu7x:2x2x1
jax: 0.10.0
libtpu: 0.0.40
codegen_flags: <defaults>
</compile_context>

<pallas_src>
import functools

import numpy as np
import jax
import jax.numpy as jnp
from jax.experimental import pallas as pl
from jax.experimental.pallas import tpu as pltpu


def _e2s_kernel(stream_u, n_rows, tiles_per_core, tile_rows, *refs):
    """Grid = (core, node_tile).  out_ref holds this core's (1, B_pad, H)
    partial s_g, resident across the inner ("arbitrary") node-tile axis."""
    if stream_u:
        (ne_ref, gn_ref, un_ref, seg_ref, cnt_ref,
         w2n_ref, w2g_ref, w2u_ref, b2_ref, w1_ref, b1_ref, p_ref,
         out_ref) = refs
    else:
        (ne_ref, gn_ref, seg_ref, cnt_ref,
         w2n_ref, w2g_ref, b2_ref, w1_ref, b1_ref, p_ref, out_ref) = refs
        un_ref = w2u_ref = None

    @pl.when(pl.program_id(1) == 0)
    def _init():
        out_ref[...] = jnp.zeros_like(out_ref)

    tn = ne_ref.shape[0]
    b_pad = p_ref.shape[0]

    # Row-validity mask for the ragged tail tile (and for clamped/duplicated
    # tiles when tiles don't divide evenly across cores): OOB rows of the
    # input blocks hold unspecified data and must not contribute.
    base = (pl.program_id(0) * tiles_per_core + pl.program_id(1)) * tile_rows
    row_ids = base + jax.lax.broadcasted_iota(jnp.int32, (tn, 1), 0)
    valid = row_ids < n_rows                                          # (tn, 1)

    # Session one-hot rebuilt in-kernel from the tiny seg-id column (VPU).
    onehot = (jax.lax.broadcasted_iota(jnp.int32, (tn, b_pad), 1)
              == seg_ref[...]).astype(jnp.float32)                    # (tn,Bp)

    # z = sigmoid(W_2 @ cat(v_n_repeat, node, global, u_n_repeat) + b_2),
    # as a sum of per-stream dots (no concat temporary).  The per-session
    # constant contributions (v_n_repeat, and u_n_repeat when hoisted) arrive
    # as the table p and are broadcast to nodes via a tiny (tn,Bp)@(Bp,H) dot.
    ne_f32 = ne_ref[...]
    cdt = w2n_ref.dtype                                               # MXU dtype
    z_lin = (jnp.dot(ne_f32.astype(cdt), w2n_ref[...],
                     preferred_element_type=jnp.float32)
             + jnp.dot(gn_ref[...].astype(cdt), w2g_ref[...],
                       preferred_element_type=jnp.float32)
             + jnp.dot(onehot, p_ref[...],
                       preferred_element_type=jnp.float32))
    if stream_u:
        z_lin = z_lin + jnp.dot(un_ref[...].astype(cdt), w2u_ref[...],
                                preferred_element_type=jnp.float32)
    z = jax.nn.sigmoid(z_lin + b2_ref[...])                           # f32 (EUP)

    # alpha = W_1(z) + b_1 as a VPU multiply + lane reduction — MXU stays free.
    alpha = jnp.sum(z * w1_ref[...], axis=-1, keepdims=True) + b1_ref[...]

    # s_g partial: one_hot^T @ (num_count * alpha * node_embedding), with the
    # invalid (OOB) rows forced to exactly zero (jnp.where, not a multiply, so
    # unspecified/NaN garbage cannot leak through the matmul).
    sgw = jnp.where(valid, cnt_ref[...] * alpha * ne_f32, 0.0)        # (tn, H)
    contrib = jax.lax.dot_general(onehot, sgw, (((0,), (0,)), ((), ())),
                                  preferred_element_type=jnp.float32)  # (Bp,H)
    out_ref[...] += contrib[None, :, :]


def _round_up(x, m):
    return ((x + m - 1) // m) * m


def embedding2score_with_u(node_embedding, global_node_embedding, num_count,
                           u_n_repeat, sections, params, *,
                           assume_u_repeated=True, tile_n=2048, num_cores=None,
                           compute_dtype=jnp.float32, vmem_budget_bytes=None):
    """Wrapper: gathers / per-session hoists / finalize in plain JAX; the
    node-streaming hot path runs in the Pallas kernel.  No padded or cast
    copies of the big (N, H) streams are materialized."""
    sections = np.asarray(sections)
    B = int(sections.shape[0])

    node_embedding = jnp.asarray(node_embedding, jnp.float32)
    global_node_embedding = jnp.asarray(global_node_embedding, jnp.float32)
    u_n_repeat = jnp.asarray(u_n_repeat, jnp.float32)
    num_count = jnp.asarray(num_count, jnp.float32).reshape(-1)
    N, H = node_embedding.shape

    # --- host-side session bookkeeping: O(N), no O(N*B) one-hot --------------
    last_idx = np.cumsum(sections) - 1                                   # (B,)
    first_idx = np.concatenate([[0], np.cumsum(sections)[:-1]])          # (B,)
    seg_ids = np.repeat(np.arange(B, dtype=np.int32), sections)          # (N,)

    # Weights stored as (in, out) — transpose real torch nn.Linear weights
    # (stored (out, in)) before passing them here.
    W1 = jnp.asarray(params["W1"], jnp.float32)        # (H, 1)
    b1 = jnp.asarray(params["b1"], jnp.float32).reshape(1, 1)
    W2 = jnp.asarray(params["W2"], jnp.float32)        # (4H, H)
    b2 = jnp.asarray(params["b2"], jnp.float32).reshape(1, H)
    W5 = jnp.asarray(params["W5"], jnp.float32)        # (2H, H)
    b5 = jnp.asarray(params["b5"], jnp.float32).reshape(1, H)

    stack_v_n = node_embedding[last_idx]                # (B, H) last node/session
    # Hoisted per-session W_2 projections: v_n_repeat always; u_n_repeat too
    # when it is (as its name and the module's usage imply) a user embedding
    # repeated per node within each session.
    p = stack_v_n @ W2[:H]
    if assume_u_repeated:
        u_sess = u_n_repeat[first_idx]                  # (B, H)
        p = p + u_sess @ W2[3 * H:4 * H]
    stream_u = not assume_u_repeated

    B_pad = _round_up(B, 8)
    p_pad = jnp.zeros((B_pad, H), jnp.float32).at[:B, :].set(p)

    seg_col = jnp.asarray(seg_ids.reshape(N, 1))        # (N, 1) int32
    cnt_col = num_count.reshape(N, 1)                   # (N, 1) f32

    # W_2 split into per-stream (H, H) blocks (small constants).
    w2_node = W2[H:2 * H].astype(compute_dtype)
    w2_glob = W2[2 * H:3 * H].astype(compute_dtype)
    w2_user = W2[3 * H:4 * H].astype(compute_dtype)
    w1_row = W1.reshape(1, H)                           # f32

    # --- per-generation VMEM budget and TensorCore split ---------------------
    kind = ""
    try:
        kind = jax.devices()[0].device_kind.lower()
    except Exception:
        pass
    if vmem_budget_bytes is None:
        if "v7" in kind:
            vmem_budget_bytes = 56 * 2 ** 20            # 64 MiB physical / TC
        elif ("v5 lite" in kind) or ("v5e" in kind) or ("v6" in kind):
            vmem_budget_bytes = 100 * 2 ** 20           # 128 MiB physical
        else:
            vmem_budget_bytes = 64 * 2 ** 20            # conservative default
    if num_cores is None:
        num_cores = 2 if "v7" in kind else 1            # v5e/v6e are single-TC

    # --- tile size from the VMEM budget (sweepable) ---------------------------
    n_streams = 3 if stream_u else 2
    tile_n = max(8, (int(tile_n) // 8) * 8)
    stream_row_bytes = n_streams * H * 4 + 8            # f32 streams + seg + cnt
    temp_row_bytes = (2 * H + B_pad + 4) * 4            # z, sgw, onehot, alpha
    const_bytes = 2 * (n_streams * H * H * 4 + (B_pad + 3) * H * 4 + 16)
    out_bytes = 2 * B_pad * H * 4
    avail = max(int(vmem_budget_bytes) - const_bytes - out_bytes, 1 << 20)
    cap = avail // (2 * stream_row_bytes + temp_row_bytes)
    tile_n = max(8, min(tile_n, (int(cap) // 8) * 8))

    # Block rows: full N when it fits in one block (always legal — equal to the
    # full array dim), otherwise a multiple of 8 with a masked ragged tail.
    tile_rows = N if N <= tile_n else min(tile_n, (N // 8) * 8)
    n_tiles = -(-N // tile_rows)
    num_cores = max(1, min(int(num_cores), n_tiles))
    tpc = -(-n_tiles // num_cores)                      # node tiles per core

    if num_cores == 1:
        row_map = lambda c, i: (i, 0)
    else:
        # Clamp so a core whose range runs past the last tile re-reads a valid
        # tile; its rows are then fully masked out by `valid` in the kernel.
        row_map = lambda c, i: (jnp.minimum(c * tpc + i, n_tiles - 1), 0)

    row_spec = lambda w: pl.BlockSpec((tile_rows, w), row_map)
    const_spec = lambda a: pl.BlockSpec(a.shape, lambda c, i: (0, 0))

    operands = [node_embedding, global_node_embedding]
    specs = [row_spec(H), row_spec(H)]
    if stream_u:
        operands.append(u_n_repeat)
        specs.append(row_spec(H))
    operands += [seg_col, cnt_col]
    specs += [row_spec(1), row_spec(1)]
    consts = ([w2_node, w2_glob] + ([w2_user] if stream_u else [])
              + [b2, w1_row, b1, p_pad])
    operands += consts
    specs += [const_spec(a) for a in consts]

    kernel = functools.partial(_e2s_kernel, stream_u, N, tpc, tile_rows)

    s_g_parts = pl.pallas_call(
        kernel,
        out_shape=jax.ShapeDtypeStruct((num_cores, B_pad, H), jnp.float32),
        grid_spec=pltpu.PrefetchScalarGridSpec(
            num_scalar_prefetch=0,
            grid=(int(num_cores), int(tpc)),
            in_specs=specs,
            out_specs=pl.BlockSpec((1, B_pad, H), lambda c, i: (c, 0, 0)),
        ),
        compiler_params=pltpu.CompilerParams(
            dimension_semantics=("parallel", "arbitrary"),
            vmem_limit_bytes=int(vmem_budget_bytes)),
    )(*operands)

    s_g = jnp.sum(s_g_parts, axis=0)[:B, :H]            # merge core partials
    # Tiny one-shot finalize in plain JAX (kept out of the kernel).
    s_h = jnp.concatenate([stack_v_n, s_g], axis=-1) @ W5 + b5
    return s_h


def init_params(key, hidden):
    """Deterministic torch-Linear-style init; weights stored as (in, out)."""
    def linear(k, fan_in, fan_out):
        k1, k2 = jax.random.split(k)
        bound = 1.0 / np.sqrt(fan_in)
        w = jax.random.uniform(k1, (fan_in, fan_out), jnp.float32, -bound, bound)
        b = jax.random.uniform(k2, (1, fan_out), jnp.float32, -bound, bound)
        return w, b
    keys = jax.random.split(key, 3)
    p = {}
    p["W1"], p["b1"] = linear(keys[0], hidden, 1)
    p["W2"], p["b2"] = linear(keys[1], 4 * hidden, hidden)
    p["W5"], p["b5"] = linear(keys[2], 2 * hidden, hidden)
    # W_3 / W_4 / user_linear / user_out exist in the torch module but are unused
    return p


def ref_forward(node_emb, glob_emb, num_count, u_n_repeat, sections, params):
    """Pure-JAX f32 reference of the torch forward (multi-session branch)."""
    sections = np.asarray(sections)
    B = sections.shape[0]
    last_idx = np.cumsum(sections) - 1
    seg_ids = np.repeat(np.arange(B), sections)
    vnr = node_emb[last_idx[seg_ids]]
    x = jnp.concatenate([vnr, node_emb, glob_emb, u_n_repeat], axis=-1)
    z = jax.nn.sigmoid(x @ params["W2"] + params["b2"])
    alpha = z @ params["W1"] + params["b1"]
    sgw = num_count.reshape(-1, 1) * alpha * node_emb
    seg_onehot = (seg_ids[:, None] == np.arange(B)[None, :]).astype(np.float32)
    s_g = seg_onehot.T @ sgw
    stack_v_n = node_emb[last_idx]
    return jnp.concatenate([stack_v_n, s_g], axis=-1) @ params["W5"] + params["b5"]


if __name__ == "__main__":
    key = jax.random.PRNGKey(0)

    # --- small demo consistent with the module: hidden=32, 3 sessions --------
    hidden = 32
    sections = np.array([5, 8, 11], dtype=np.int32)      # 24 nodes total
    B = int(sections.shape[0])
    N = int(sections.sum())

    k_ne, k_gn, k_u, k_uarb, k_cnt, k_par, k_rest = jax.random.split(key, 7)
    node_emb = jax.random.normal(k_ne, (N, hidden), jnp.float32)
    glob_emb = jax.random.normal(k_gn, (N, hidden), jnp.float32)
    user_emb = jax.random.normal(k_u, (B, hidden), jnp.float32)
    u_rep = user_emb[np.repeat(np.arange(B), sections)]   # user emb repeated/node
    u_arb = jax.random.normal(k_uarb, (N, hidden), jnp.float32)
    num_count = jax.random.randint(k_cnt, (N,), 1, 5).astype(jnp.float32)
    params = init_params(k_par, hidden)

    # 1) hoisted-u fast path (u_n_repeat is a per-session user embedding).
    ref1 = ref_forward(node_emb, glob_emb, num_count, u_rep, sections, params)
    out1 = jax.block_until_ready(
        embedding2score_with_u(node_emb, glob_emb, num_count, u_rep, sections,
                               params, assume_u_repeated=True))
    np.testing.assert_allclose(np.asarray(out1), np.asarray(ref1),
                               rtol=1e-4, atol=1e-4)

    # 2) exact general path: arbitrary per-node u_n_repeat stays streamed.
    ref2 = ref_forward(node_emb, glob_emb, num_count, u_arb, sections, params)
    out2 = jax.block_until_ready(
        embedding2score_with_u(node_emb, glob_emb, num_count, u_arb, sections,
                               params, assume_u_repeated=False))
    np.testing.assert_allclose(np.asarray(out2), np.asarray(ref2),
                               rtol=1e-4, atol=1e-4)

    # 3) multi-tile + ragged-tail (and, on 2-TC parts, core-split) exercise.
    hidden2 = 64
    sections2 = np.array([37, 81, 12, 100, 70], dtype=np.int32)   # 300 nodes
    N2 = int(sections2.sum())
    ka, kb, kc, kd, ke = jax.random.split(k_rest, 5)
    ne2 = jax.random.normal(ka, (N2, hidden2), jnp.float32)
    gn2 = jax.random.normal(kb, (N2, hidden2), jnp.float32)
    un2 = jax.random.normal(kc, (N2, hidden2), jnp.float32)
    cnt2 = jax.random.randint(kd, (N2,), 1, 7).astype(jnp.float32)
    params2 = init_params(ke, hidden2)
    ref3 = ref_forward(ne2, gn2, cnt2, un2, sections2, params2)
    out3 = jax.block_until_ready(
        embedding2score_with_u(ne2, gn2, cnt2, un2, sections2, params2,
                               assume_u_repeated=False, tile_n=128))
    np.testing.assert_allclose(np.asarray(out3), np.asarray(ref3),
                               rtol=1e-3, atol=1e-3)

    # 4) bf16 MXU path (in-kernel cast only; HBM streams stay f32).
    out4 = jax.block_until_ready(
        embedding2score_with_u(ne2, gn2, cnt2, un2, sections2, params2,
                               assume_u_repeated=False, tile_n=128,
                               compute_dtype=jnp.bfloat16))
    np.testing.assert_allclose(np.asarray(out4), np.asarray(ref3),
                               rtol=5e-2, atol=5e-2)

    print("KERNEL_OK")
</pallas_src>

<mosaic_0001>
module attributes {stable_mosaic.version = 11 : i64} {
  func.func @_e2s_kernel(%arg0: i32, %arg1: i32, %arg2: memref<24x32xf32, #tpu.memory_space<vmem>>, %arg3: memref<24x32xf32, #tpu.memory_space<vmem>>, %arg4: memref<24x1xi32, #tpu.memory_space<vmem>>, %arg5: memref<24x1xf32, #tpu.memory_space<vmem>>, %arg6: memref<32x32xf32, #tpu.memory_space<vmem>>, %arg7: memref<32x32xf32, #tpu.memory_space<vmem>>, %arg8: memref<1x32xf32, #tpu.memory_space<vmem>>, %arg9: memref<1x32xf32, #tpu.memory_space<vmem>>, %arg10: memref<1x1xf32, #tpu.memory_space<vmem>>, %arg11: memref<8x32xf32, #tpu.memory_space<vmem>>, %arg12: memref<1x8x32xf32, #tpu.memory_space<vmem>>) attributes {dimension_semantics = [#tpu.dimension_semantics<parallel>, #tpu.dimension_semantics<arbitrary>], iteration_bounds = array<i64: 1, 1>, scalar_prefetch = 0 : i64, scratch_operands = 0 : i64, tpu.core_type = #tpu.core_type<tc>, window_params = [{transform_indices = @transform_0, window_bounds = array<i64: 24, 32>}, {transform_indices = @transform_1, window_bounds = array<i64: 24, 32>}, {transform_indices = @transform_2, window_bounds = array<i64: 24, 1>}, {transform_indices = @transform_3, window_bounds = array<i64: 24, 1>}, {pipeline_mode = #tpu.pipeline_mode<synchronous>, transform_indices = @transform_4, window_bounds = array<i64: 32, 32>}, {pipeline_mode = #tpu.pipeline_mode<synchronous>, transform_indices = @transform_5, window_bounds = array<i64: 32, 32>}, {pipeline_mode = #tpu.pipeline_mode<synchronous>, transform_indices = @transform_6, window_bounds = array<i64: 1, 32>}, {pipeline_mode = #tpu.pipeline_mode<synchronous>, transform_indices = @transform_7, window_bounds = array<i64: 1, 32>}, {pipeline_mode = #tpu.pipeline_mode<synchronous>, transform_indices = @transform_8, window_bounds = array<i64: 1, 1>}, {pipeline_mode = #tpu.pipeline_mode<synchronous>, transform_indices = @transform_9, window_bounds = array<i64: 8, 32>}, {transform_indices = @transform_10, window_bounds = array<i64: 1, 8, 32>}]} {
    %c0_i32 = arith.constant 0 : i32
    %0 = arith.cmpi eq, %arg1, %c0_i32 : i32
    %1 = arith.extui %0 : i1 to i32
    %c0_i32_0 = arith.constant 0 : i32
    %2 = arith.cmpi ne, %1, %c0_i32_0 : i32
    scf.if %2 {
      %cst_33 = arith.constant 0.000000e+00 : f32
      %56 = vector.broadcast %cst_33 : f32 to vector<1x8x32xf32>
      %c0_34 = arith.constant 0 : index
      %c0_35 = arith.constant 0 : index
      %c0_36 = arith.constant 0 : index
      %57 = vector.load %arg12[%c0_34, %c0_35, %c0_36] : memref<1x8x32xf32, #tpu.memory_space<vmem>>, vector<1x8x32xf32>
      tpu.vector_store %arg12[%c0_34, %c0_35, %c0_36], %56 {strides = array<i32>} : memref<1x8x32xf32, #tpu.memory_space<vmem>>, vector<1x8x32xf32>,
    } else {
    }
    %c1_i32 = arith.constant 1 : i32
    %3 = arith.muli %arg0, %c1_i32 : i32
    %4 = arith.addi %3, %arg1 : i32
    %c24_i32 = arith.constant 24 : i32
    %5 = arith.muli %4, %c24_i32 : i32
    %6 = tpu.iota {dimensions = array<i32: 0>} : vector<24x1xi32>
    %7 = vector.broadcast %5 : i32 to vector<24x1xi32>
    %8 = arith.addi %7, %6 : vector<24x1xi32>
    %c24_i32_1 = arith.constant 24 : i32
    %9 = vector.broadcast %c24_i32_1 : i32 to vector<24x1xi32>
    %10 = arith.cmpi slt, %8, %9 : vector<24x1xi32>
    %11 = tpu.iota {dimensions = array<i32: 1>} : vector<24x8xi32>
    %c0 = arith.constant 0 : index
    %c0_2 = arith.constant 0 : index
    %12 = vector.load %arg4[%c0, %c0_2] : memref<24x1xi32, #tpu.memory_space<vmem>>, vector<24x1xi32>
    %13 = vector.broadcast %12 : vector<24x1xi32> to vector<24x8xi32>
    %14 = arith.cmpi eq, %11, %13 : vector<24x8xi32>
    %15 = arith.extui %14 : vector<24x8xi1> to vector<24x8xi32>
    %16 = arith.sitofp %15 : vector<24x8xi32> to vector<24x8xf32>
    %c0_3 = arith.constant 0 : index
    %c0_4 = arith.constant 0 : index
    %17 = vector.load %arg2[%c0_3, %c0_4] : memref<24x32xf32, #tpu.memory_space<vmem>>, vector<24x32xf32>
    %c0_5 = arith.constant 0 : index
    %c0_6 = arith.constant 0 : index
    %18 = vector.load %arg6[%c0_5, %c0_6] : memref<32x32xf32, #tpu.memory_space<vmem>>, vector<32x32xf32>
    %cst = arith.constant dense<0.000000e+00> : vector<24x32xf32>
    %19 = tpu.matmul %17, %18, %cst {dimension_numbers = #tpu.dot_dimension_numbers<[1], [0], [0], [1], [0, 0, 1, 1], [], []>} : vector<24x32xf32>, vector<32x32xf32>, vector<24x32xf32> -> vector<24x32xf32>
    %c0_7 = arith.constant 0 : index
    %c0_8 = arith.constant 0 : index
    %20 = vector.load %arg3[%c0_7, %c0_8] : memref<24x32xf32, #tpu.memory_space<vmem>>, vector<24x32xf32>
    %c0_9 = arith.constant 0 : index
    %c0_10 = arith.constant 0 : index
    %21 = vector.load %arg7[%c0_9, %c0_10] : memref<32x32xf32, #tpu.memory_space<vmem>>, vector<32x32xf32>
    %cst_11 = arith.constant dense<0.000000e+00> : vector<24x32xf32>
    %22 = tpu.matmul %20, %21, %cst_11 {dimension_numbers = #tpu.dot_dimension_numbers<[1], [0], [0], [1], [0, 0, 1, 1], [], []>} : vector<24x32xf32>, vector<32x32xf32>, vector<24x32xf32> -> vector<24x32xf32>
    %23 = arith.addf %19, %22 : vector<24x32xf32>
    %c0_12 = arith.constant 0 : index
    %c0_13 = arith.constant 0 : index
    %24 = vector.load %arg11[%c0_12, %c0_13] : memref<8x32xf32, #tpu.memory_space<vmem>>, vector<8x32xf32>
    %cst_14 = arith.constant dense<0.000000e+00> : vector<24x32xf32>
    %25 = tpu.matmul %16, %24, %cst_14 {dimension_numbers = #tpu.dot_dimension_numbers<[1], [0], [0], [1], [0, 0, 1, 1], [], []>} : vector<24x8xf32>, vector<8x32xf32>, vector<24x32xf32> -> vector<24x32xf32>
    %26 = arith.addf %23, %25 : vector<24x32xf32>
    %c0_15 = arith.constant 0 : index
    %c0_16 = arith.constant 0 : index
    %27 = vector.load %arg8[%c0_15, %c0_16] : memref<1x32xf32, #tpu.memory_space<vmem>>, vector<1x32xf32>
    %28 = vector.broadcast %27 : vector<1x32xf32> to vector<24x32xf32>
    %29 = arith.addf %26, %28 : vector<24x32xf32>
    %30 = arith.negf %29 : vector<24x32xf32>
    %31 = math.exp %30 : vector<24x32xf32>
    %cst_17 = arith.constant 1.000000e+00 : f32
    %32 = vector.broadcast %cst_17 : f32 to vector<24x32xf32>
    %33 = arith.addf %32, %31 : vector<24x32xf32>
    %34 = arith.divf %32, %33 : vector<24x32xf32>
    %c0_18 = arith.constant 0 : index
    %c0_19 = arith.constant 0 : index
    %35 = vector.load %arg9[%c0_18, %c0_19] : memref<1x32xf32, #tpu.memory_space<vmem>>, vector<1x32xf32>
    %36 = vector.broadcast %35 : vector<1x32xf32> to vector<24x32xf32>
    %37 = arith.mulf %34, %36 : vector<24x32xf32>
    %cst_20 = arith.constant dense<0.000000e+00> : vector<24xf32>
    %38 = vector.multi_reduction <add>, %37, %cst_20 [1] : vector<24x32xf32> to vector<24xf32>
    %39 = vector.shape_cast %38 : vector<24xf32> to vector<24x1xf32>
    %c0_21 = arith.constant 0 : index
    %c0_22 = arith.constant 0 : index
    %40 = vector.load %arg10[%c0_21, %c0_22] : memref<1x1xf32, #tpu.memory_space<vmem>>, vector<1x1xf32>
    %41 = vector.broadcast %40 : vector<1x1xf32> to vector<24x1xf32>
    %42 = arith.addf %39, %41 : vector<24x1xf32>
    %c0_23 = arith.constant 0 : index
    %c0_24 = arith.constant 0 : index
    %43 = vector.load %arg5[%c0_23, %c0_24] : memref<24x1xf32, #tpu.memory_space<vmem>>, vector<24x1xf32>
    %44 = arith.mulf %43, %42 : vector<24x1xf32>
    %45 = vector.broadcast %44 : vector<24x1xf32> to vector<24x32xf32>
    %46 = arith.mulf %45, %17 : vector<24x32xf32>
    %cst_25 = arith.constant 0.000000e+00 : f32
    %47 = vector.shape_cast %10 : vector<24x1xi1> to vector<24x1xi1>
    %48 = vector.broadcast %47 : vector<24x1xi1> to vector<24x32xi1>
    %49 = vector.broadcast %cst_25 : f32 to vector<24x32xf32>
    %50 = arith.select %48, %46, %49 : vector<24x32xi1>, vector<24x32xf32>
    %cst_26 = arith.constant dense<0.000000e+00> : vector<8x32xf32>
    %51 = tpu.matmul %16, %50, %cst_26 {dimension_numbers = #tpu.dot_dimension_numbers<[0], [0], [1], [1], [0, 1, 1, 1], [], []>} : vector<24x8xf32>, vector<24x32xf32>, vector<8x32xf32> -> vector<8x32xf32>
    %c0_27 = arith.constant 0 : index
    %c0_28 = arith.constant 0 : index
    %c0_29 = arith.constant 0 : index
    %52 = vector.load %arg12[%c0_27, %c0_28, %c0_29] : memref<1x8x32xf32, #tpu.memory_space<vmem>>, vector<1x8x32xf32>
    %53 = vector.shape_cast %51 : vector<8x32xf32> to vector<1x8x32xf32>
    %54 = arith.addf %52, %53 : vector<1x8x32xf32>
    %c0_30 = arith.constant 0 : index
    %c0_31 = arith.constant 0 : index
    %c0_32 = arith.constant 0 : index
    %55 = vector.load %arg12[%c0_30, %c0_31, %c0_32] : memref<1x8x32xf32, #tpu.memory_space<vmem>>, vector<1x8x32xf32>
    tpu.vector_store %arg12[%c0_30, %c0_31, %c0_32], %54 {strides = array<i32>} : memref<1x8x32xf32, #tpu.memory_space<vmem>>, vector<1x8x32xf32>,
    return
  }
  func.func @transform_0(%arg0: i32, %arg1: i32) -> (i32, i32) {
    %c0_i32 = arith.constant 0 : i32
    %c0_i32_0 = arith.constant 0 : i32
    return %arg1, %c0_i32 : i32, i32
  }
  func.func @transform_1(%arg0: i32, %arg1: i32) -> (i32, i32) {
    %c0_i32 = arith.constant 0 : i32
    %c0_i32_0 = arith.constant 0 : i32
    return %arg1, %c0_i32 : i32, i32
  }
  func.func @transform_2(%arg0: i32, %arg1: i32) -> (i32, i32) {
    %c0_i32 = arith.constant 0 : i32
    %c0_i32_0 = arith.constant 0 : i32
    return %arg1, %c0_i32 : i32, i32
  }
  func.func @transform_3(%arg0: i32, %arg1: i32) -> (i32, i32) {
    %c0_i32 = arith.constant 0 : i32
    %c0_i32_0 = arith.constant 0 : i32
    return %arg1, %c0_i32 : i32, i32
  }
  func.func @transform_4(%arg0: i32, %arg1: i32) -> (i32, i32) {
    %c0_i32 = arith.constant 0 : i32
    %c0_i32_0 = arith.constant 0 : i32
    %c0_i32_1 = arith.constant 0 : i32
    return %c0_i32, %c0_i32_0 : i32, i32
  }
  func.func @transform_5(%arg0: i32, %arg1: i32) -> (i32, i32) {
    %c0_i32 = arith.constant 0 : i32
    %c0_i32_0 = arith.constant 0 : i32
    %c0_i32_1 = arith.constant 0 : i32
    return %c0_i32, %c0_i32_0 : i32, i32
  }
  func.func @transform_6(%arg0: i32, %arg1: i32) -> (i32, i32) {
    %c0_i32 = arith.constant 0 : i32
    %c0_i32_0 = arith.constant 0 : i32
    %c0_i32_1 = arith.constant 0 : i32
    return %c0_i32, %c0_i32_0 : i32, i32
  }
  func.func @transform_7(%arg0: i32, %arg1: i32) -> (i32, i32) {
    %c0_i32 = arith.constant 0 : i32
    %c0_i32_0 = arith.constant 0 : i32
    %c0_i32_1 = arith.constant 0 : i32
    return %c0_i32, %c0_i32_0 : i32, i32
  }
  func.func @transform_8(%arg0: i32, %arg1: i32) -> (i32, i32) {
    %c0_i32 = arith.constant 0 : i32
    %c0_i32_0 = arith.constant 0 : i32
    %c0_i32_1 = arith.constant 0 : i32
    return %c0_i32, %c0_i32_0 : i32, i32
  }
  func.func @transform_9(%arg0: i32, %arg1: i32) -> (i32, i32) {
    %c0_i32 = arith.constant 0 : i32
    %c0_i32_0 = arith.constant 0 : i32
    %c0_i32_1 = arith.constant 0 : i32
    return %c0_i32, %c0_i32_0 : i32, i32
  }
  func.func @transform_10(%arg0: i32, %arg1: i32) -> (i32, i32, i32) {
    %c0_i32 = arith.constant 0 : i32
    %c0_i32_0 = arith.constant 0 : i32
    %c0_i32_1 = arith.constant 0 : i32
    return %arg0, %c0_i32, %c0_i32_0 : i32, i32, i32
  }
}

</mosaic_0001>

<bundles_post_ra>
// kernel: tpu_custom_call.1
= control target key start
LH: loop header
LB: loop body
LE: loop exit
PB: predicated region body
PF: predicated region fallthrough
CT: control target
= control target key end

     0   :  { %s1360_s0 = inlined_call_operand.hbm [shape: f32[24,32], index: 0, kind: input, shape index: {}]   ;;  %s1361_s1 = inlined_call_operand.hbm [shape: f32[24,32], index: 1, kind: input, shape index: {}]   ;;  %s1362_s2 = inlined_call_operand.hbm [shape: s32[24,1], index: 2, kind: input, shape index: {}]   ;;  %s1363_s3 = inlined_call_operand.hbm [shape: f32[24,1], index: 3, kind: input, shape index: {}]   ;;  %s1364_s4 = inlined_call_operand.hbm [shape: f32[32,32], index: 4, kind: input, shape index: {}]   ;;  %s1365_s5 = inlined_call_operand.hbm [shape: f32[32,32], index: 5, kind: input, shape index: {}]   ;;  %s1366_s6 = inlined_call_operand.hbm [shape: f32[1,32], index: 6, kind: input, shape index: {}]   ;;  %s1367_s7 = inlined_call_operand.hbm [shape: f32[1,32], index: 7, kind: input, shape index: {}]   ;;  %s1368_s8 = inlined_call_operand.<no memory space> [shape: f32[1,1], index: 8, kind: input, shape index: {}]   ;;  %s1369_s9 = inlined_call_operand.hbm [shape: f32[8,32], index: 9, kind: input, shape index: {}]   ;;  %s1370_s10 = inlined_call_operand.hbm [shape: f32[1,8,32], index: 10, kind: output, shape index: {}]  }
   0x1   :  { %v15_v0 = vstv %s1368_s8 }
   0x2   :  { %16 = vst [vmem:[#allocation2] sm:$0x1] %v15_v0 }
   0x3   :  { %17 = vsyncpa [#allocation4], 0 }
   0x4   :  { %18 = vsyncpa [#allocation7], 0 }
   0x5   :  { %19 = vsyncpa [#allocation10], 0 }
   0x6   :  { %20 = vsyncpa [#allocation13], 0 }
   0x7   :  { %21 = vsyncpa [#allocation16], 0 }
   0x8   :  { %22 = vsyncpa [#allocation5], 0  ;;  %s1073_s15 = smov [#allocation6]   ;;  %s1074_s17 = smov [#allocation9]  }
   0x9   :  { %s40_s16 = sshll.u32 %s1073_s15, 4  ;;  %s64_s18 = sshll.u32 %s1074_s17, 4  ;;  %s41_s16 = int_to_ptr.vmem [resolvable:$true] %s40_s16  ;;  %s1147_s18 = int_to_ptr.vmem [resolvable:$true] %s64_s18 }
   0xa   :  { %s841_s21 = scalar_lea.hbm %s1361_s1, 384 }
   0xb   :  { %p842_p0 = scmp.ne.s32.totalorder %s1361_s1, %s841_s21  ;;  %p845_p1 = scmp.lt.u32.totalorder %s841_s21, %s1361_s1 }
   0xd   :  { %p847_p2 = pnand %p845_p1, %p842_p0 }
   0xf   :  { %850 = shalt.err (!%p847_p2)
}
  0x10   :  { %s851_s25 = scalar_lea.vmem %s41_s16, 384  ;;  %p856_p4 = scmp.lt.s32.totalorder %s41_s16, %s41_s16 }
  0x11   :  { %p852_p3 = scmp.ne.s32.totalorder %s41_s16, %s851_s25  ;;  %p857_p5 = scmp.lt.s32.totalorder %s851_s25, %s851_s25 }
  0x13   :  { %p858_p6 = por %p857_p5, %p856_p4 }
  0x15   :  { %p859_p7 = pnand %p858_p6, %p852_p3 }
  0x17   :  { %862 = shalt.err (!%p859_p7)
}
  0x18   :  { %s1075_s26 = smov 128   ;;  %s1076_s27 = smov 8  }
  0x19   :  { %46 = dma.hbm_to_vmem [thread:$0]  %s1361_s1, 384, %s41_s16, [#allocation7], %s1075_s26, %s1075_s26, %s1076_s27  }
  0x1a   :  { %s863_s12 = scalar_lea.hbm %s1363_s3, 384 }
  0x1b   :  { %p864_p8 = scmp.ne.s32.totalorder %s1363_s3, %s863_s12  ;;  %p867_p9 = scmp.lt.u32.totalorder %s863_s12, %s1363_s3 }
  0x1d   :  { %p869_p10 = pnand %p867_p9, %p864_p8 }
  0x1f   :  { %872 = shalt.err (!%p869_p10)
}
  0x20   :  { %s873_s19 = scalar_lea.vmem %s1147_s18, 384  ;;  %p878_p12 = scmp.lt.s32.totalorder %s1147_s18, %s1147_s18 }
  0x21   :  { %p874_p11 = scmp.ne.s32.totalorder %s1147_s18, %s873_s19  ;;  %p879_p13 = scmp.lt.s32.totalorder %s873_s19, %s873_s19 }
  0x23   :  { %p880_p0 = por %p879_p13, %p878_p12 }
  0x25   :  { %p881_p1 = pnand %p880_p0, %p874_p11 }
  0x27   :  { %884 = shalt.err (!%p881_p1)
}
  0x28   :  { %70 = dma.hbm_to_vmem [thread:$0]  %s1363_s3, 384, %s1147_s18, [#allocation10], %s1075_s26, %s1075_s26, %s1076_s27  }
  0x29   :  { %s1077_s20 = smov [#allocation12]   ;;  %s1078_s22 = smov [#allocation15]  }
  0x2a   :  { %s88_s21 = sshll.u32 %s1077_s20, 4  ;;  %s111_s8 = sshll.u32 %s1078_s22, 4  ;;  %s89_s21 = int_to_ptr.vmem [resolvable:$true] %s88_s21  ;;  %s112_s8 = int_to_ptr.vmem [resolvable:$true] %s111_s8 }
  0x2b   :  { %s885_s25 = scalar_lea.hbm %s1365_s5, 512 }
  0x2c   :  { %p886_p2 = scmp.ne.s32.totalorder %s1365_s5, %s885_s25  ;;  %p889_p3 = scmp.lt.u32.totalorder %s885_s25, %s1365_s5 }
  0x2e   :  { %p891_p4 = pnand %p889_p3, %p886_p2 }
  0x30   :  { %894 = shalt.err (!%p891_p4)
}
  0x31   :  { %s895_s3 = scalar_lea.vmem %s89_s21, 512  ;;  %p900_p6 = scmp.lt.s32.totalorder %s89_s21, %s89_s21 }
  0x32   :  { %p896_p5 = scmp.ne.s32.totalorder %s89_s21, %s895_s3  ;;  %p901_p7 = scmp.lt.s32.totalorder %s895_s3, %s895_s3 }
  0x34   :  { %p902_p8 = por %p901_p7, %p900_p6 }
  0x36   :  { %p903_p9 = pnand %p902_p8, %p896_p5 }
  0x38   :  { %906 = shalt.err (!%p903_p9)
}
  0x39   :  { %94 = dma.hbm_to_vmem [thread:$0]  %s1365_s5, 512, %s89_s21, [#allocation13], %s1075_s26, %s1075_s26, %s1076_s27  }
  0x3a   :  { %s907_s15 = scalar_lea.hbm %s1367_s7, 16 }
  0x3b   :  { %p908_p10 = scmp.ne.s32.totalorder %s1367_s7, %s907_s15  ;;  %p911_p11 = scmp.lt.u32.totalorder %s907_s15, %s1367_s7 }
  0x3d   :  { %p913_p12 = pnand %p911_p11, %p908_p10 }
  0x3f   :  { %916 = shalt.err (!%p913_p12)
}
  0x40   :  { %s917_s20 = scalar_lea.vmem %s112_s8, 16  ;;  %s921_s22 = scalar_lea.vmem %s112_s8, 32 }
  0x41   :  { %p918_p13 = scmp.ne.s32.totalorder %s112_s8, %s917_s20  ;;  %p922_p0 = scmp.lt.s32.totalorder %s112_s8, %s112_s8 }
  0x42   :  { %p923_p1 = scmp.lt.s32.totalorder %s921_s22, %s917_s20 }
  0x44   :  { %p924_p2 = por %p923_p1, %p922_p0 }
  0x46   :  { %p925_p3 = pnand %p924_p2, %p918_p13 }
  0x48   :  { %928 = shalt.err (!%p925_p3)
}
  0x49   :  { %114 = dma.hbm_to_vmem [thread:$0]  %s1367_s7, 16, %s112_s8, [#allocation16]  }
  0x4a   :  { %s1079_s23 = smov [#allocation3]   ;;  %s1080_s25 = smov [#allocation8]  }
  0x4b   :  { %s28_s24 = sshll.u32 %s1079_s23, 4  ;;  %s52_s28 = sshll.u32 %s1080_s25, 4  ;;  %s29_s24 = int_to_ptr.vmem [resolvable:$true] %s28_s24  ;;  %s1211_s28 = int_to_ptr.vmem [resolvable:$true] %s52_s28 }
  0x4c   :  { %s929_s11 = scalar_lea.hbm %s1360_s0, 384 }
  0x4d   :  { %p930_p4 = scmp.ne.s32.totalorder %s1360_s0, %s929_s11  ;;  %p933_p5 = scmp.lt.u32.totalorder %s929_s11, %s1360_s0 }
  0x4f   :  { %p935_p6 = pnand %p933_p5, %p930_p4 }
  0x51   :  { %938 = shalt.err (!%p935_p6)
}
  0x52   :  { %s939_s7 = scalar_lea.vmem %s29_s24, 384  ;;  %p944_p8 = scmp.lt.s32.totalorder %s29_s24, %s29_s24 }
  0x53   :  { %p940_p7 = scmp.ne.s32.totalorder %s29_s24, %s939_s7  ;;  %p945_p9 = scmp.lt.s32.totalorder %s939_s7, %s939_s7 }
  0x55   :  { %p946_p10 = por %p945_p9, %p944_p8 }
  0x57   :  { %p947_p11 = pnand %p946_p10, %p940_p7 }
  0x59   :  { %950 = shalt.err (!%p947_p11)
}
  0x5a   :  { %34 = dma.hbm_to_vmem [thread:$0]  %s1360_s0, 384, %s29_s24, [#allocation4], %s1075_s26, %s1075_s26, %s1076_s27  }
  0x5b   :  { %s951_s19 = scalar_lea.hbm %s1362_s2, 384 }
  0x5c   :  { %p952_p12 = scmp.ne.s32.totalorder %s1362_s2, %s951_s19  ;;  %p955_p13 = scmp.lt.u32.totalorder %s951_s19, %s1362_s2 }
  0x5e   :  { %p957_p0 = pnand %p955_p13, %p952_p12 }
  0x60   :  { %960 = shalt.err (!%p957_p0)
}
  0x61   :  { %s961_s5 = scalar_lea.vmem %s1211_s28, 384  ;;  %p966_p2 = scmp.lt.s32.totalorder %s1211_s28, %s1211_s28 }
  0x62   :  { %p962_p1 = scmp.ne.s32.totalorder %s1211_s28, %s961_s5  ;;  %p967_p3 = scmp.lt.s32.totalorder %s961_s5, %s961_s5 }
  0x64   :  { %p968_p4 = por %p967_p3, %p966_p2 }
  0x66   :  { %p969_p5 = pnand %p968_p4, %p962_p1 }
  0x68   :  { %972 = shalt.err (!%p969_p5)
}
  0x69   :  { %58 = dma.hbm_to_vmem [thread:$0]  %s1362_s2, 384, %s1211_s28, [#allocation7], %s1075_s26, %s1075_s26, %s1076_s27  }
  0x6a   :  { %s1081_s23 = smov [#allocation11]   ;;  %s1082_s25 = smov [#allocation14]  }
  0x6b   :  { %s76_s24 = sshll.u32 %s1081_s23, 4  ;;  %s101_s29 = sshll.u32 %s1082_s25, 4  ;;  %s77_s24 = int_to_ptr.vmem [resolvable:$true] %s76_s24  ;;  %s102_s29 = int_to_ptr.vmem [resolvable:$true] %s101_s29 }
  0x6c   :  { %s973_s3 = scalar_lea.hbm %s1364_s4, 512 }
  0x6d   :  { %p974_p6 = scmp.ne.s32.totalorder %s1364_s4, %s973_s3  ;;  %p977_p7 = scmp.lt.u32.totalorder %s973_s3, %s1364_s4 }
  0x6f   :  { %p979_p8 = pnand %p977_p7, %p974_p6 }
  0x71   :  { %982 = shalt.err (!%p979_p8)
}
  0x72   :  { %s983_s2 = scalar_lea.vmem %s77_s24, 512  ;;  %p988_p10 = scmp.lt.s32.totalorder %s77_s24, %s77_s24 }
  0x73   :  { %p984_p9 = scmp.ne.s32.totalorder %s77_s24, %s983_s2  ;;  %p989_p11 = scmp.lt.s32.totalorder %s983_s2, %s983_s2 }
  0x75   :  { %p990_p12 = por %p989_p11, %p988_p10 }
  0x77   :  { %p991_p13 = pnand %p990_p12, %p984_p9 }
  0x79   :  { %994 = shalt.err (!%p991_p13)
}
  0x7a   :  { %82 = dma.hbm_to_vmem [thread:$0]  %s1364_s4, 512, %s77_s24, [#allocation10], %s1075_s26, %s1075_s26, %s1076_s27  }
  0x7b   :  { %s995_s17 = scalar_lea.hbm %s1366_s6, 16 }
  0x7c   :  { %p996_p0 = scmp.ne.s32.totalorder %s1366_s6, %s995_s17  ;;  %p999_p1 = scmp.lt.u32.totalorder %s995_s17, %s1366_s6 }
  0x7e   :  { %p1001_p2 = pnand %p999_p1, %p996_p0 }
  0x80   :  { %1004 = shalt.err (!%p1001_p2)
}
  0x81   :  { %s1005_s22 = scalar_lea.vmem %s102_s29, 16  ;;  %s1009_s5 = scalar_lea.vmem %s102_s29, 32 }
  0x82   :  { %p1006_p3 = scmp.ne.s32.totalorder %s102_s29, %s1005_s22  ;;  %p1010_p4 = scmp.lt.s32.totalorder %s102_s29, %s102_s29 }
  0x83   :  { %p1011_p5 = scmp.lt.s32.totalorder %s1009_s5, %s1005_s22 }
  0x85   :  { %p1012_p6 = por %p1011_p5, %p1010_p4 }
  0x87   :  { %p1013_p7 = pnand %p1012_p6, %p1006_p3 }
  0x89   :  { %1016 = shalt.err (!%p1013_p7)
}
  0x8a   :  { %104 = dma.hbm_to_vmem [thread:$0]  %s1366_s6, 16, %s102_s29, [#allocation13]  }
  0x8b   :  { %s1083_s27 = smov [#allocation17]   ;;  %s1017_s24 = scalar_lea.hbm %s1369_s9, 128 }
  0x8c   :  { %s123_s0 = sshll.u32 %s1083_s27, 4  ;;  %p1018_p8 = scmp.ne.s32.totalorder %s1369_s9, %s1017_s24  ;;  %s124_s0 = int_to_ptr.vmem [resolvable:$true] %s123_s0 }
  0x8d   :  { %p1021_p9 = scmp.lt.u32.totalorder %s1017_s24, %s1369_s9 }
  0x8f   :  { %p1023_p10 = pnand %p1021_p9, %p1018_p8 }
  0x91   :  { %1026 = shalt.err (!%p1023_p10)
}
  0x92   :  { %s1027_s18 = scalar_lea.vmem %s124_s0, 128  ;;  %p1032_p12 = scmp.lt.s32.totalorder %s124_s0, %s124_s0 }
  0x93   :  { %p1028_p11 = scmp.ne.s32.totalorder %s124_s0, %s1027_s18  ;;  %p1033_p13 = scmp.lt.s32.totalorder %s1027_s18, %s1027_s18 }
  0x95   :  { %p1034_p0 = por %p1033_p13, %p1032_p12 }
  0x97   :  { %p1035_p1 = pnand %p1034_p0, %p1028_p11 }
  0x99   :  { %1038 = shalt.err (!%p1035_p1)
}
  0x9a   :  { %126 = dma.hbm_to_vmem [thread:$0]  %s1369_s9, 128, %s124_s0, [#allocation16]  }
  0x9b   :  { %1061 = dma.done.wait [#allocation4], 384  }
  0x9c   :  { %1062 = vsyncadd [#allocation4], 4294966912 }
  0x9d   :  { %1063 = dma.done.wait [#allocation7], 768  }
  0x9e   :  { %1064 = vsyncadd [#allocation7], 4294966528 }
  0x9f   :  { %1065 = dma.done.wait [#allocation10], 896  }
  0xa0   :  { %1066 = vsyncadd [#allocation10], 4294966400 }
  0xa1   :  { %1067 = dma.done.wait [#allocation13], 528  }
  0xa2   :  { %1068 = vsyncadd [#allocation13], 4294966768 }
  0xa3   :  { %1069 = dma.done.wait [#allocation16], 144  }
  0xa4   :  { %1070 = vsyncadd [#allocation16], 4294967152  ;;  %v1084_v1 = vmov 0   ;;  %vm158_vm0 = vcmask 261120   ;;  %v1085_v2 = vmov 0.0|0.0   ;;  %v1086_v3 = vmov 0.0  }
  0xa5   :  { %827 = vset.pattern.permute.xlu0 %v1084_v1  ;;  %828 = vset.pattern.permute.xlu1 %v1084_v1  ;;  %159 = vst.msk [vmem:[#allocation18] sm:$0xff] %vm158_vm0, %v1086_v3  ;;  %vm1087_vm1 = vmmov 0   ;;  %v175_v4 = vld [vmem:[#allocation8] sm:$0xff]  ;;  %v176_v5 = vld [vmem:[#allocation8 + $0x8] sm:$0xff]  ;;  %v177_v6 = vld [vmem:[#allocation8 + $0x10] sm:$0xff]  ;;  %v173_v26 = vlaneseq  ;;  %vm390_vm2 = vcmask 64512  }
  0xa6   :  { %796 = vmatprep.subr.bf16.mxu0 %v1085_v2  ;;  %802 = vmatprep.subr.bf16.mxu1 %v1085_v2  ;;  %v206_v7 = vld [vmem:[#allocation12] sm:$0xff]  ;;  %v207_v8 = vld [vmem:[#allocation12 + $0x8] sm:$0xff]  ;;  %v208_v12 = vld [vmem:[#allocation12 + $0x10] sm:$0xff]  ;;  %vm605_vm6 = vcmask 195584   ;;  %s1088_s9 = smov [#allocation18]  }
  0xa7   :  { %750 = vmatprep.mubr.msk.f32.mxu0 %vm1087_vm1, %v1086_v3  ;;  %767 = vmatprep.mubr.msk.f32.mxu1 %vm1087_vm1, %v1086_v3  ;;  %v199_v9 = vld [vmem:[#allocation11] sm:$0xff]  ;;  %v797_v10 = vpack.c.bf16 %v207_v8, %v206_v7  ;;  %v200_v11 = vld [vmem:[#allocation11 + $0x8] sm:$0xff]  ;;  %v209_v13 = vld [vmem:[#allocation12 + $0x18] sm:$0xff]  ;;  %v174_v27 = vand.u32 127, %v173_v26  ;;  %s688_s12 = sshll.u32 %s1088_s9, 4  ;;  %s689_s12 = int_to_ptr.vmem [resolvable:$true] %s688_s12 }
  0xa8   :  { %179 = vperm.xlu0 %827, %v175_v4   ;;  %185 = vperm.xlu1 %828, %v177_v6   ;;  %v803_v14 = vpack.c.bf16 %v200_v11, %v199_v9  ;;  %v201_v15 = vld [vmem:[#allocation11 + $0x10] sm:$0xff]  ;;  %v202_v16 = vld [vmem:[#allocation11 + $0x18] sm:$0xff]  ;;  %v800_v17 = vpack.c.bf16 %v209_v13, %v208_v12  ;;  %v1294_v20 = vld [vmem:[#allocation3] sm:$0xff]  ;;  %s1039_s13 = scalar_lea.vmem %s689_s12, 128  ;;  %p1044_p3 = scmp.lt.s32.totalorder %s689_s12, %s689_s12 }
  0xa9   :  { %798 = vmatpush3.bf16.msra.mxu0 %v797_v10  ;;  %v806_v18 = vpack.c.bf16 %v202_v16, %v201_v15  ;;  %v203_v19 = vld [vmem:[#allocation6] sm:$0xff]  ;;  %v389_v21 = vld [vmem:[#allocation17] sm:$0xff]  ;;  %v1312_v25 = vld [vmem:[#allocation3 + $0x10] sm:$0xff]  ;;  %p1040_p2 = scmp.ne.s32.totalorder %s689_s12, %s1039_s13  ;;  %p1045_p4 = scmp.lt.s32.totalorder %s1039_s13, %s1039_s13 }
  0xaa   :  { %804 = vmatpush3.bf16.msra.mxu1 %v803_v14  ;;  %799 = vmatprep.subr.bf16.mxu0 %v1085_v2  ;;  %v204_v22 = vld [vmem:[#allocation6 + $0x8] sm:$0xff]  ;;  %v1303_v23 = vld [vmem:[#allocation3 + $0x8] sm:$0xff]  ;;  %v541_v26 = vld [vmem:[#allocation9 + $0x8] sm:$0xff] }
  0xab   :  { %805 = vmatprep.subr.bf16.mxu1 %v1085_v2  ;;  %v205_v24 = vld [vmem:[#allocation6 + $0x10] sm:$0xff]  ;;  %v713_v50 = vld [vmem:[#allocation14] ss:$0 sm:$0xff]  ;;  %v717_v8 = vld [vmem:[#allocation15] ss:$0 sm:$0xff]  ;;  %p1046_p5 = por %p1045_p4, %p1044_p3 }
  0xac   :  { %182 = vperm.xlu0 %827, %v176_v5  }
  0xad   :  { %801 = vmatpush3.bf16.msra.mxu0 %v800_v17  ;;  %p1047_p6 = pnand %p1046_p5, %p1040_p2 }
  0xae   :  { %807 = vmatpush3.bf16.msra.mxu1 %v806_v18  ;;  %776 = vmatprep.subr.mxu0 %v1086_v3  ;;  %v718_v18 = vld [vmem:[#allocation2] ss:$0 sm:$0xff] }
  0xaf   :  { %808 = vmatprep.subr.bf16.mxu1 %v1085_v2 }
  0xb0   :  { %751 = vmatmul.mubr.msk.f32.vlgmr.msra.gmra.mrb[0].mxu0 %vm158_vm0, %v203_v19  ;;  %v540_v19 = vld [vmem:[#allocation9] sm:$0xff] }
  0xb1   :  { %768 = vmatmul.mubr.msk.f32.vlgmr.msra.gmra.mrb[0].mxu1 %vm158_vm0, %v1294_v20  ;;  %777 = vmatpush3.msra.mxu0 %v389_v21 }
  0xb2   :  { %753 = vmatprep.mubr.msk.f32.mxu0 %vm1087_vm1, %v1086_v3  ;;  %770 = vmatprep.mubr.msk.f32.mxu1 %vm1087_vm1, %v1086_v3 }
  0xb4   :  { %754 = vmatmul.mubr.msk.f32.gmra.mrb[2].mxu0 %vm158_vm0, %v204_v22 }
  0xb5   :  { %771 = vmatmul.mubr.msk.f32.gmra.mrb[2].mxu1 %vm158_vm0, %v1303_v23  ;;  %756 = vmatprep.mubr.msk.f32.mxu0 %vm1087_vm1, %v1086_v3 }
  0xb6   :  { %773 = vmatprep.mubr.msk.f32.mxu1 %vm1087_vm1, %v1086_v3 }
  0xb8   :  { %757 = vmatmul.mubr.msk.f32.gmra.mrb[4].mxu0 %vm158_vm0, %v205_v24 }
  0xb9   :  { %774 = vmatmul.mubr.msk.f32.gmra.mrb[4].mxu1 %vm158_vm0, %v1312_v25  ;;  %778 = vmatprep.mubr.msk.f32.mxu0 %vm1087_vm1, %v1086_v3 }
  0xba   :  { %793 = vmatprep.mubr.msk.f32.mxu1 %vm1087_vm1, %v1086_v3 }
 0x127   :  { %v180_v28 = vpop.permute.xlu0 %179  ;;  %v186_v30 = vpop.permute.xlu1 %185 }
 0x128   :  { %vm187_vm3 = vcmp.eq.s32.totalorder %v174_v27, %v180_v28  ;;  %vm189_vm5 = vcmp.eq.s32.totalorder %v174_v27, %v186_v30 }
 0x129   :  { %v1322_v29 = vsel %vm187_vm3, 1.0, %v1086_v3  ;;  %v1332_v33 = vsel %vm189_vm5, 1.0, %v1086_v3 }
 0x12a   :  { %779 = vmatmul.mubr.msk.f32.vlgmr.msra.gmra.mrb[6].mxu0 %vm390_vm2, %v1322_v29 }
 0x12b   :  { %v183_v31 = vpop.permute.xlu0 %182  ;;  %781 = vmatprep.mubr.msk.f32.mxu0 %vm1087_vm1, %v1086_v3 }
 0x12c   :  { %vm188_vm4 = vcmp.eq.s32.totalorder %v174_v27, %v183_v31  ;;  %v542_v31 = vld [vmem:[#allocation9 + $0x10] sm:$0xff] }
 0x12d   :  { %v1328_v32 = vsel %vm188_vm4, 1.0, %v1086_v3 }
 0x12e   :  { %782 = vmatmul.mubr.msk.f32.gmra.mrb[8].mxu0 %vm390_vm2, %v1328_v32 }
 0x12f   :  { %784 = vmatprep.mubr.msk.f32.mxu0 %vm1087_vm1, %v1086_v3 }
 0x132   :  { %785 = vmatmul.mubr.msk.f32.gmra.mrb[10].mxu0 %vm390_vm2, %v1332_v33 }
 0x183   :  { %v286_v34 = vpop.f32.mrb[0].mxu0 }
 0x184   :  { %v752_v35 = vpop.f32.mrb[1].mxu0  ;;  %v375_v36 = vpop.f32.mrb[0].mxu1 }
 0x185   :  { %v376_v37 = vadd.f32 %v375_v36, %v286_v34  ;;  %v769_v38 = vpop.f32.mrb[1].mxu1 }
 0x187   :  { %v291_v39 = vpop.f32.mrb[2].mxu0 }
 0x188   :  { %v755_v40 = vpop.f32.mrb[3].mxu0  ;;  %v380_v41 = vpop.f32.mrb[2].mxu1 }
 0x189   :  { %v381_v42 = vadd.f32 %v380_v41, %v291_v39  ;;  %v772_v43 = vpop.f32.mrb[3].mxu1 }
 0x18b   :  { %v296_v44 = vpop.f32.mrb[4].mxu0 }
 0x18c   :  { %v758_v45 = vpop.f32.mrb[5].mxu0  ;;  %v385_v46 = vpop.f32.mrb[4].mxu1 }
 0x18d   :  { %v386_v47 = vadd.f32 %v385_v46, %v296_v44  ;;  %v775_v48 = vpop.f32.mrb[5].mxu1 }
 0x1fd   :  { %v466_v49 = vpop.f32.mrb[6].mxu0 }
 0x1fe   :  { %v480_v51 = vadd.f32 %v466_v49, %v376_v37  ;;  %v780_v52 = vpop.f32.mrb[7].mxu0 }
 0x200   :  { %v490_v53 = vadd.f32 %v713_v50, %v480_v51 }
 0x201   :  { %v471_v54 = vpop.f32.mrb[8].mxu0 }
 0x202   :  { %v714_v55 = vmul.f32 -1.442695, %v490_v53  ;;  %v481_v56 = vadd.f32 %v471_v54, %v381_v42  ;;  %v783_v57 = vpop.f32.mrb[9].mxu0 }
 0x204   :  { %829 = vpow2.f32 %v714_v55  ;;  %v491_v58 = vadd.f32 %v713_v50, %v481_v56 }
 0x205   :  { %v476_v59 = vpop.f32.mrb[10].mxu0 }
 0x206   :  { %v715_v60 = vmul.f32 -1.442695, %v491_v58  ;;  %v482_v61 = vadd.f32 %v476_v59, %v386_v47  ;;  %v786_v62 = vpop.f32.mrb[11].mxu0 }
 0x208   :  { %831 = vpow2.f32 %v715_v60  ;;  %v492_v63 = vadd.f32 %v713_v50, %v482_v61 }
 0x20a   :  { %v716_v0 = vmul.f32 -1.442695, %v492_v63 }
 0x20c   :  { %833 = vpow2.f32 %v716_v0 }
 0x20e   :  { %v830_v1 = vpop.eup %829 }
 0x20f   :  { %v502_v2 = vadd.f32 1.0, %v830_v1 }
 0x211   :  { %835 = vrcp.f32 %v502_v2 }
 0x212   :  { %v832_v4 = vpop.eup %831 }
 0x213   :  { %v503_v5 = vadd.f32 1.0, %v832_v4 }
 0x215   :  { %837 = vrcp.f32 %v503_v5 }
 0x216   :  { %v834_v6 = vpop.eup %833 }
 0x217   :  { %v504_v7 = vadd.f32 1.0, %v834_v6 }
 0x219   :  { %839 = vrcp.f32 %v504_v7 }
 0x21b   :  { %v836_v9 = vpop.eup %835 }
 0x21c   :  { %v518_v10 = vmul.f32 %v836_v9, %v717_v8 }
 0x21e   :  { %v521_v11 = vsel %vm158_vm0, %v518_v10, 0.0 }
 0x21f   :  { %v838_v12 = vpop.eup %837  ;;  %522 = vadd.xlane.f32.xlu1 %v521_v11 }
 0x220   :  { %v519_v13 = vmul.f32 %v838_v12, %v717_v8 }
 0x222   :  { %v524_v14 = vsel %vm158_vm0, %v519_v13, 0.0 }
 0x223   :  { %v840_v15 = vpop.eup %839  ;;  %525 = vadd.xlane.f32.xlu0 %v524_v14 }
 0x224   :  { %v520_v16 = vmul.f32 %v840_v15, %v717_v8 }
 0x226   :  { %v527_v17 = vsel %vm158_vm0, %v520_v16, 0.0 }
 0x227   :  { %528 = vadd.xlane.f32.xlu0 %v527_v17 }
 0x2ac   :  { %v523_v21 = vpop.xlane.xlu1 %522 }
 0x2ad   :  { %v537_v22 = vadd.f32 %v718_v18, %v523_v21 }
 0x2af   :  { %v543_v24 = vmul.f32 %v540_v19, %v537_v22 }
 0x2b0   :  { %v526_v27 = vpop.xlane.xlu0 %525 }
 0x2b1   :  { %v538_v28 = vadd.f32 %v718_v18, %v526_v27  ;;  %548 = vperm.xlu1 %828, %v543_v24  }
 0x2b3   :  { %v544_v30 = vmul.f32 %v541_v26, %v538_v28 }
 0x2b4   :  { %v529_v34 = vpop.xlane.xlu0 %528 }
 0x2b5   :  { %v539_v35 = vadd.f32 %v718_v18, %v529_v34  ;;  %553 = vperm.xlu0 %827, %v544_v30  }
 0x2b7   :  { %v545_v36 = vmul.f32 %v542_v31, %v539_v35 }
 0x2b9   :  { %558 = vperm.xlu1 %828, %v545_v36  }
 0x2e2   :  { %573 = vxpose.xlu1.b32.start [1/3] (short) (narrow) %v1322_v29, 8 }
 0x2e6   :  { %574 = vxpose.xlu1.b32.cont [2/3] (short) (narrow) %v1328_v32, 8  ;;  %v679_v32 = vld [vmem:[#allocation18] sm:$0xff] }
 0x2ea   :  { %575 = vxpose.xlu1.b32.end [3/3] (short) (narrow) %v1332_v33, 8 }
 0x330   :  { %v549_v37 = vpop.permute.xlu1 %548 }
 0x331   :  { %v561_v39 = vmul.f32 %v549_v37, %v1294_v20 }
 0x334   :  { %v554_v38 = vpop.permute.xlu0 %553 }
 0x335   :  { %v562_v40 = vmul.f32 %v554_v38, %v1303_v23 }
 0x337   :  { %v809_v41 = vpack.c.bf16 %v562_v40, %v561_v39 }
 0x338   :  { %v559_v42 = vpop.permute.xlu1 %558 }
 0x339   :  { %810 = vmatpush3.bf16.msra.mxu1 %v809_v41  ;;  %v563_v43 = vmul.f32 %v559_v42, %v1312_v25 }
 0x33a   :  { %791 = vmatprep.subr.mxu1 %v1086_v3 }
 0x33d   :  { %792 = vmatpush3.msra.mxu1 %v563_v43 }
 0x362   :  { %v589_v29 = vpop.trf.xlu1 }
 0x363   :  { %794 = vmatmul.mubr.msk.f32.vlgmr.msra.gmra.mrb[6].mxu1 %vm605_vm6, %v589_v29 }
 0x436   :  { %v675_v33 = vpop.f32.mrb[6].mxu1 }
 0x437   :  { %v680_v44 = vadd.f32 %v679_v32, %v675_v33  ;;  %v795_v45 = vpop.f32.mrb[7].mxu1 }
 0x439   :  { %681 = vst.msk [vmem:[#allocation18] sm:$0xff] %vm158_vm0, %v680_v44 }
 0x43a   :  { %1050 = shalt.err (!%p1047_p6)
}
 0x43b   :  { %s1051_s28 = scalar_lea.hbm %s1370_s10, 128 }
 0x43c   :  { %p1052_p7 = scmp.ne.s32.totalorder %s1370_s10, %s1051_s28  ;;  %p1055_p8 = scmp.lt.u32.totalorder %s1051_s28, %s1370_s10 }
 0x43e   :  { %p1057_p9 = pnand %p1055_p8, %p1052_p7 }
 0x440   :  { %1060 = shalt.err (!%p1057_p9)
}
 0x441   :  { %691 = dma.vmem_to_hbm [thread:$0]  %s689_s12, 128, %s1370_s10, [#allocation5]  }
 0x442   :  { %1071 = dma.done.wait [#allocation5], 128  }
 0x443   :  { %1072 = vsyncadd [#allocation5], 4294967168 }
 0x444   :  { %695 = vsyncpa [#allocation4], 1 }
 0x445   :  { %696 = vsyncpa [#allocation7], 1 }
 0x446   :  { %697 = vsyncpa [#allocation10], 1 }
 0x447   :  { %698 = vsyncpa [#allocation13], 1 }
 0x448   :  { %699 = vsyncpa [#allocation16], 1 }
 0x449   :  { %700 = vsyncpa [#allocation5], 1 }

</bundles_post_ra>
